<compile_context>
chip_gen: v7x
topology: tpu7x:2x2x1
jax: 0.10.0
libtpu: 0.0.40
codegen_flags: <defaults>
</compile_context>

<pallas_src>
import functools

import jax
import jax.numpy as jnp
from jax.experimental import pallas as pl
from jax.experimental.pallas import tpu as pltpu


def _round_up(x, m):
    return (x + m - 1) // m * m


def _conv_stats_kernel(x_ref, w_ref, y_ref, sum_ref, ssq_ref, *, K, dilation):
    """Temporal conv for one sample + per-sample channel sum / sum-of-squares.

    x_ref:   (1, T + (K-1)*dilation, Vp, Cip)  bf16  time-padded input slab (sample n)
    w_ref:   (K, Cip, Cop)                     bf16
    y_ref:   (1, T, Vp, Cop)                   bf16  conv output (sample n)
    sum_ref: (1, 1, Cop)                       f32   per-sample partial sum
    ssq_ref: (1, 1, Cop)                       f32   per-sample partial sum of squares
    """
    _, T, Vp, Cop = y_ref.shape
    Cip = w_ref.shape[1]

    acc = jnp.zeros((T * Vp, Cop), jnp.float32)
    for k in range(K):  # static unroll; K is small (5 / 1)
        off = k * dilation
        xk = x_ref[0, off:off + T, :, :].reshape(T * Vp, Cip)
        acc = acc + jnp.dot(xk, w_ref[k], preferred_element_type=jnp.float32)

    y_ref[...] = acc.reshape(1, T, Vp, Cop).astype(y_ref.dtype)
    # Padded V / Cout positions are exactly zero (zero inputs / zero weight columns,
    # no bias), so summing over the whole padded block leaves the batch statistics
    # unchanged; the wrapper divides by the real (unpadded) element count.
    sum_ref[...] = jnp.sum(acc, axis=0).reshape(1, 1, Cop)
    ssq_ref[...] = jnp.sum(acc * acc, axis=0).reshape(1, 1, Cop)


def _bn_kernel(y_ref, scale_ref, shift_ref, o_ref, *, relu):
    """y * scale + shift (scale/shift precomputed wrapper-side), optional ReLU, in place."""
    y = y_ref[...].astype(jnp.float32)
    out = y * scale_ref[0, 0] + shift_ref[0, 0]
    if relu:
        out = jnp.maximum(out, 0.0)
    o_ref[...] = out.astype(o_ref.dtype)


@functools.partial(
    jax.jit,
    static_argnames=("kernel_size", "stride", "dilation", "eps", "relu"))
def conv_bn_forward(x_nchw, weight, bias, gamma, beta, *,
                    kernel_size=5, stride=1, dilation=1, eps=1e-5, relu=False):
    """Conv2d((K,1), dilation=(d,1), 'same' time padding) + training-mode BatchNorm2d.

    x_nchw: (N, Cin, T, V); weight: (Cout, Cin, K, 1). Returns (N, Cout, T, V) f32.
    Covers UnitTCN (K=5/1, d=1), TemporalConv (K, d), and conv1x1+BN(+ReLU) prefixes.
    """
    del bias  # exactly cancelled by training-mode BN mean subtraction (init to 0 anyway)
    assert stride == 1  # TODO(synk): stride > 1 not implemented (module default is 1)
    N, Cin, T, V = x_nchw.shape
    Cout, _, K, _ = weight.shape
    assert K == kernel_size and K % 2 == 1
    pad_t = ((K - 1) * dilation) // 2          # == (K + (K-1)*(dilation-1) - 1) // 2
    Tp = T + 2 * pad_t                         # == T + (K-1)*dilation

    LANE, SUB = 128, 16                        # lane width / bf16 sublane packing
    Cip = _round_up(Cin, LANE)
    Cop = _round_up(Cout, LANE)
    Vp = _round_up(V, SUB)

    # Layout glue (tiny vs. the two passes; fuses under jit): channels-last, one pad op
    # covering the time halo + V/C alignment, bf16 for the MXU.
    x = jnp.transpose(x_nchw, (0, 2, 3, 1))
    x = jnp.pad(x, ((0, 0), (pad_t, pad_t), (0, Vp - V), (0, Cip - Cin)))
    x = x.astype(jnp.bfloat16)                                        # (N, Tp, Vp, Cip)
    w = jnp.transpose(weight[:, :, :, 0], (2, 1, 0))                  # (K, Cin, Cout)
    w = jnp.pad(w, ((0, 0), (0, Cip - Cin), (0, Cop - Cout))).astype(jnp.bfloat16)

    y, s, ss = pl.pallas_call(
        functools.partial(_conv_stats_kernel, K=K, dilation=dilation),
        out_shape=(
            jax.ShapeDtypeStruct((N, T, Vp, Cop), jnp.bfloat16),
            jax.ShapeDtypeStruct((N, 1, Cop), jnp.float32),
            jax.ShapeDtypeStruct((N, 1, Cop), jnp.float32),
        ),
        grid_spec=pltpu.PrefetchScalarGridSpec(
            num_scalar_prefetch=0,
            grid=(N,),
            in_specs=[
                pl.BlockSpec((1, Tp, Vp, Cip), lambda n: (n, 0, 0, 0)),
                pl.BlockSpec((K, Cip, Cop), lambda n: (0, 0, 0)),
            ],
            out_specs=(
                pl.BlockSpec((1, T, Vp, Cop), lambda n: (n, 0, 0, 0)),
                pl.BlockSpec((1, 1, Cop), lambda n: (n, 0, 0)),
                pl.BlockSpec((1, 1, Cop), lambda n: (n, 0, 0)),
            ),
        ),
        compiler_params=pltpu.CompilerParams(
            dimension_semantics=("parallel",),          # no cross-grid accumulator
        ),
    )(x, w)

    # Tiny (Cop,)-sized batch-stat reduction + scale/shift fold, hoisted out of the
    # per-sample BN pass.  Biased variance, training-mode BatchNorm2d.
    count = float(N * T * V)                            # real (unpadded) element count
    mean = jnp.sum(s[:, 0, :], axis=0) / count
    var = jnp.maximum(jnp.sum(ss[:, 0, :], axis=0) / count - mean * mean, 0.0)
    gamma_p = jnp.pad(gamma.astype(jnp.float32), (0, Cop - Cout))
    beta_p = jnp.pad(beta.astype(jnp.float32), (0, Cop - Cout))
    scale = gamma_p * jax.lax.rsqrt(var + eps)
    shift = beta_p - mean * scale

    out = pl.pallas_call(
        functools.partial(_bn_kernel, relu=relu),
        out_shape=jax.ShapeDtypeStruct((N, T, Vp, Cop), jnp.bfloat16),
        grid_spec=pltpu.PrefetchScalarGridSpec(
            num_scalar_prefetch=0,
            grid=(N,),
            in_specs=[
                pl.BlockSpec((1, T, Vp, Cop), lambda n: (n, 0, 0, 0)),
                pl.BlockSpec((1, 1, Cop), lambda n: (0, 0, 0)),
                pl.BlockSpec((1, 1, Cop), lambda n: (0, 0, 0)),
            ],
            out_specs=pl.BlockSpec((1, T, Vp, Cop), lambda n: (n, 0, 0, 0)),
        ),
        input_output_aliases={0: 0},                    # normalize y in place
        compiler_params=pltpu.CompilerParams(
            dimension_semantics=("parallel",),
        ),
    )(y, scale.reshape(1, 1, Cop), shift.reshape(1, 1, Cop))

    out = out[:, :, :V, :Cout].astype(jnp.float32)      # drop alignment padding
    return jnp.transpose(out, (0, 3, 1, 2))             # back to NCHW: (N, Cout, T, V)


def _reference(x, weight, bias, gamma, beta, *, dilation=1, eps=1e-5, relu=False):
    """Pure-JAX f32 reference of the PyTorch forward (training-mode BN)."""
    K = weight.shape[2]
    pad = ((K - 1) * dilation) // 2
    y = jax.lax.conv_general_dilated(
        x, weight, window_strides=(1, 1), padding=((pad, pad), (0, 0)),
        rhs_dilation=(dilation, 1),
        dimension_numbers=("NCHW", "OIHW", "NCHW"))
    y = y + bias[None, :, None, None]
    mean = jnp.mean(y, axis=(0, 2, 3), keepdims=True)
    var = jnp.mean((y - mean) ** 2, axis=(0, 2, 3), keepdims=True)
    out = (gamma[None, :, None, None] * (y - mean) * jax.lax.rsqrt(var + eps)
           + beta[None, :, None, None])
    if relu:
        out = jnp.maximum(out, 0.0)
    return out


def _run_case(key, *, N, Cin, Cout, T, V, K, dilation, relu, name):
    k_x, k_w, k_g, k_b = jax.random.split(key, 4)
    # conv_init: kaiming_normal_(fan_out) => std = sqrt(2 / (Cout * K * 1)); bias = 0
    w_std = (2.0 / (Cout * K * 1)) ** 0.5
    weight = jax.random.normal(k_w, (Cout, Cin, K, 1), jnp.float32) * w_std
    bias = jnp.zeros((Cout,), jnp.float32)
    gamma = 1.0 + 0.1 * jax.random.normal(k_g, (Cout,), jnp.float32)
    beta = 0.1 * jax.random.normal(k_b, (Cout,), jnp.float32)
    x = jax.random.normal(k_x, (N, Cin, T, V), jnp.float32)  # NCHW = (N, C, T, V)

    out = conv_bn_forward(x, weight, bias, gamma, beta,
                          kernel_size=K, stride=1, dilation=dilation, relu=relu)
    out = jax.block_until_ready(out)
    ref = _reference(x, weight, bias, gamma, beta, dilation=dilation, relu=relu)

    assert out.shape == (N, Cout, T, V), name
    assert bool(jnp.all(jnp.isfinite(out))), name
    # bf16 operands + bf16 intermediate storage => relaxed tolerance vs f32 reference.
    err = jnp.max(jnp.abs(out - ref))
    assert jnp.allclose(out, ref, atol=5e-2, rtol=5e-2), f"{name}: max abs err = {err}"
    return out


if __name__ == "__main__":
    root = jax.random.PRNGKey(0)
    k0, k1, k2 = jax.random.split(root, 3)

    # UnitTCN (EncodingBlock residual / main temporal conv): K=5, dilation=1.
    _run_case(k0, N=2, Cin=4, Cout=8, T=16, V=8, K=5, dilation=1, relu=False,
              name="unit_tcn_k5")
    # TemporalConv branch of MultiScale_TemporalConv: K=5, dilation=2.
    _run_case(k1, N=2, Cin=8, Cout=8, T=16, V=8, K=5, dilation=2, relu=False,
              name="temporal_conv_k5_d2")
    # conv1x1 + BN + ReLU branch prefix of MultiScale_TemporalConv.
    _run_case(k2, N=2, Cin=8, Cout=4, T=16, V=8, K=1, dilation=1, relu=True,
              name="branch_prefix_1x1_relu")

    print("KERNEL_OK")
</pallas_src>

<mosaic_0001>
module attributes {stable_mosaic.version = 11 : i64} {
  func.func @_conv_stats_kernel(%arg0: i32, %arg1: memref<1x20x16x128xbf16, #tpu.memory_space<vmem>>, %arg2: memref<5x128x128xbf16, #tpu.memory_space<vmem>>, %arg3: memref<1x16x16x128xbf16, #tpu.memory_space<vmem>>, %arg4: memref<1x1x128xf32, #tpu.memory_space<vmem>>, %arg5: memref<1x1x128xf32, #tpu.memory_space<vmem>>) attributes {dimension_semantics = [#tpu.dimension_semantics<parallel>], iteration_bounds = array<i64: 2>, scalar_prefetch = 0 : i64, scratch_operands = 0 : i64, tpu.core_type = #tpu.core_type<tc>, window_params = [{transform_indices = @transform_0, window_bounds = array<i64: 1, 20, 16, 128>}, {pipeline_mode = #tpu.pipeline_mode<synchronous>, transform_indices = @transform_1, window_bounds = array<i64: 5, 128, 128>}, {transform_indices = @transform_2, window_bounds = array<i64: 1, 16, 16, 128>}, {transform_indices = @transform_3, window_bounds = array<i64: 1, 1, 128>}, {transform_indices = @transform_4, window_bounds = array<i64: 1, 1, 128>}]} {
    %cst = arith.constant 0.000000e+00 : f32
    %0 = vector.broadcast %cst : f32 to vector<256x128xf32>
    %c0 = arith.constant 0 : index
    %c0_0 = arith.constant 0 : index
    %c0_1 = arith.constant 0 : index
    %c0_2 = arith.constant 0 : index
    %1 = vector.load %arg1[%c0, %c0_0, %c0_1, %c0_2] : memref<1x20x16x128xbf16, #tpu.memory_space<vmem>>, vector<1x16x16x128xbf16>
    %2 = vector.shape_cast %1 : vector<1x16x16x128xbf16> to vector<16x16x128xbf16>
    %3 = vector.shape_cast %2 : vector<16x16x128xbf16> to vector<256x128xbf16>
    %c0_3 = arith.constant 0 : index
    %c0_4 = arith.constant 0 : index
    %c0_5 = arith.constant 0 : index
    %4 = vector.load %arg2[%c0_3, %c0_4, %c0_5] : memref<5x128x128xbf16, #tpu.memory_space<vmem>>, vector<1x128x128xbf16>
    %5 = vector.shape_cast %4 : vector<1x128x128xbf16> to vector<128x128xbf16>
    %cst_6 = arith.constant dense<0.000000e+00> : vector<256x128xf32>
    %6 = tpu.matmul %3, %5, %cst_6 {dimension_numbers = #tpu.dot_dimension_numbers<[1], [0], [0], [1], [0, 0, 1, 1], [], []>} : vector<256x128xbf16>, vector<128x128xbf16>, vector<256x128xf32> -> vector<256x128xf32>
    %7 = arith.addf %0, %6 : vector<256x128xf32>
    %c0_7 = arith.constant 0 : index
    %c1 = arith.constant 1 : index
    %c0_8 = arith.constant 0 : index
    %c0_9 = arith.constant 0 : index
    %8 = vector.load %arg1[%c0_7, %c1, %c0_8, %c0_9] : memref<1x20x16x128xbf16, #tpu.memory_space<vmem>>, vector<1x16x16x128xbf16>
    %9 = vector.shape_cast %8 : vector<1x16x16x128xbf16> to vector<16x16x128xbf16>
    %10 = vector.shape_cast %9 : vector<16x16x128xbf16> to vector<256x128xbf16>
    %c1_10 = arith.constant 1 : index
    %c0_11 = arith.constant 0 : index
    %c0_12 = arith.constant 0 : index
    %11 = vector.load %arg2[%c1_10, %c0_11, %c0_12] : memref<5x128x128xbf16, #tpu.memory_space<vmem>>, vector<1x128x128xbf16>
    %12 = vector.shape_cast %11 : vector<1x128x128xbf16> to vector<128x128xbf16>
    %cst_13 = arith.constant dense<0.000000e+00> : vector<256x128xf32>
    %13 = tpu.matmul %10, %12, %cst_13 {dimension_numbers = #tpu.dot_dimension_numbers<[1], [0], [0], [1], [0, 0, 1, 1], [], []>} : vector<256x128xbf16>, vector<128x128xbf16>, vector<256x128xf32> -> vector<256x128xf32>
    %14 = arith.addf %7, %13 : vector<256x128xf32>
    %c0_14 = arith.constant 0 : index
    %c2 = arith.constant 2 : index
    %c0_15 = arith.constant 0 : index
    %c0_16 = arith.constant 0 : index
    %15 = vector.load %arg1[%c0_14, %c2, %c0_15, %c0_16] : memref<1x20x16x128xbf16, #tpu.memory_space<vmem>>, vector<1x16x16x128xbf16>
    %16 = vector.shape_cast %15 : vector<1x16x16x128xbf16> to vector<16x16x128xbf16>
    %17 = vector.shape_cast %16 : vector<16x16x128xbf16> to vector<256x128xbf16>
    %c2_17 = arith.constant 2 : index
    %c0_18 = arith.constant 0 : index
    %c0_19 = arith.constant 0 : index
    %18 = vector.load %arg2[%c2_17, %c0_18, %c0_19] : memref<5x128x128xbf16, #tpu.memory_space<vmem>>, vector<1x128x128xbf16>
    %19 = vector.shape_cast %18 : vector<1x128x128xbf16> to vector<128x128xbf16>
    %cst_20 = arith.constant dense<0.000000e+00> : vector<256x128xf32>
    %20 = tpu.matmul %17, %19, %cst_20 {dimension_numbers = #tpu.dot_dimension_numbers<[1], [0], [0], [1], [0, 0, 1, 1], [], []>} : vector<256x128xbf16>, vector<128x128xbf16>, vector<256x128xf32> -> vector<256x128xf32>
    %21 = arith.addf %14, %20 : vector<256x128xf32>
    %c0_21 = arith.constant 0 : index
    %c3 = arith.constant 3 : index
    %c0_22 = arith.constant 0 : index
    %c0_23 = arith.constant 0 : index
    %22 = vector.load %arg1[%c0_21, %c3, %c0_22, %c0_23] : memref<1x20x16x128xbf16, #tpu.memory_space<vmem>>, vector<1x16x16x128xbf16>
    %23 = vector.shape_cast %22 : vector<1x16x16x128xbf16> to vector<16x16x128xbf16>
    %24 = vector.shape_cast %23 : vector<16x16x128xbf16> to vector<256x128xbf16>
    %c3_24 = arith.constant 3 : index
    %c0_25 = arith.constant 0 : index
    %c0_26 = arith.constant 0 : index
    %25 = vector.load %arg2[%c3_24, %c0_25, %c0_26] : memref<5x128x128xbf16, #tpu.memory_space<vmem>>, vector<1x128x128xbf16>
    %26 = vector.shape_cast %25 : vector<1x128x128xbf16> to vector<128x128xbf16>
    %cst_27 = arith.constant dense<0.000000e+00> : vector<256x128xf32>
    %27 = tpu.matmul %24, %26, %cst_27 {dimension_numbers = #tpu.dot_dimension_numbers<[1], [0], [0], [1], [0, 0, 1, 1], [], []>} : vector<256x128xbf16>, vector<128x128xbf16>, vector<256x128xf32> -> vector<256x128xf32>
    %28 = arith.addf %21, %27 : vector<256x128xf32>
    %c0_28 = arith.constant 0 : index
    %c4 = arith.constant 4 : index
    %c0_29 = arith.constant 0 : index
    %c0_30 = arith.constant 0 : index
    %29 = vector.load %arg1[%c0_28, %c4, %c0_29, %c0_30] : memref<1x20x16x128xbf16, #tpu.memory_space<vmem>>, vector<1x16x16x128xbf16>
    %30 = vector.shape_cast %29 : vector<1x16x16x128xbf16> to vector<16x16x128xbf16>
    %31 = vector.shape_cast %30 : vector<16x16x128xbf16> to vector<256x128xbf16>
    %c4_31 = arith.constant 4 : index
    %c0_32 = arith.constant 0 : index
    %c0_33 = arith.constant 0 : index
    %32 = vector.load %arg2[%c4_31, %c0_32, %c0_33] : memref<5x128x128xbf16, #tpu.memory_space<vmem>>, vector<1x128x128xbf16>
    %33 = vector.shape_cast %32 : vector<1x128x128xbf16> to vector<128x128xbf16>
    %cst_34 = arith.constant dense<0.000000e+00> : vector<256x128xf32>
    %34 = tpu.matmul %31, %33, %cst_34 {dimension_numbers = #tpu.dot_dimension_numbers<[1], [0], [0], [1], [0, 0, 1, 1], [], []>} : vector<256x128xbf16>, vector<128x128xbf16>, vector<256x128xf32> -> vector<256x128xf32>
    %35 = arith.addf %28, %34 : vector<256x128xf32>
    %36 = vector.shape_cast %35 : vector<256x128xf32> to vector<1x16x16x128xf32>
    %37 = arith.truncf %36 : vector<1x16x16x128xf32> to vector<1x16x16x128xbf16>
    %c0_35 = arith.constant 0 : index
    %c0_36 = arith.constant 0 : index
    %c0_37 = arith.constant 0 : index
    %c0_38 = arith.constant 0 : index
    %38 = vector.load %arg3[%c0_35, %c0_36, %c0_37, %c0_38] : memref<1x16x16x128xbf16, #tpu.memory_space<vmem>>, vector<1x16x16x128xbf16>
    tpu.vector_store %arg3[%c0_35, %c0_36, %c0_37, %c0_38], %37 {strides = array<i32>} : memref<1x16x16x128xbf16, #tpu.memory_space<vmem>>, vector<1x16x16x128xbf16>,
    %cst_39 = arith.constant dense<0.000000e+00> : vector<128xf32>
    %39 = vector.multi_reduction <add>, %35, %cst_39 [0] : vector<256x128xf32> to vector<128xf32>
    %40 = vector.shape_cast %39 : vector<128xf32> to vector<1x1x128xf32>
    %c0_40 = arith.constant 0 : index
    %c0_41 = arith.constant 0 : index
    %c0_42 = arith.constant 0 : index
    %41 = vector.load %arg4[%c0_40, %c0_41, %c0_42] : memref<1x1x128xf32, #tpu.memory_space<vmem>>, vector<1x1x128xf32>
    tpu.vector_store %arg4[%c0_40, %c0_41, %c0_42], %40 {strides = array<i32>} : memref<1x1x128xf32, #tpu.memory_space<vmem>>, vector<1x1x128xf32>,
    %42 = arith.mulf %35, %35 : vector<256x128xf32>
    %cst_43 = arith.constant dense<0.000000e+00> : vector<128xf32>
    %43 = vector.multi_reduction <add>, %42, %cst_43 [0] : vector<256x128xf32> to vector<128xf32>
    %44 = vector.shape_cast %43 : vector<128xf32> to vector<1x1x128xf32>
    %c0_44 = arith.constant 0 : index
    %c0_45 = arith.constant 0 : index
    %c0_46 = arith.constant 0 : index
    %45 = vector.load %arg5[%c0_44, %c0_45, %c0_46] : memref<1x1x128xf32, #tpu.memory_space<vmem>>, vector<1x1x128xf32>
    tpu.vector_store %arg5[%c0_44, %c0_45, %c0_46], %44 {strides = array<i32>} : memref<1x1x128xf32, #tpu.memory_space<vmem>>, vector<1x1x128xf32>,
    return
  }
  func.func @transform_0(%arg0: i32) -> (i32, i32, i32, i32) {
    %c0_i32 = arith.constant 0 : i32
    %c0_i32_0 = arith.constant 0 : i32
    %c0_i32_1 = arith.constant 0 : i32
    %c0_i32_2 = arith.constant 0 : i32
    return %arg0, %c0_i32, %c0_i32_0, %c0_i32_1 : i32, i32, i32, i32
  }
  func.func @transform_1(%arg0: i32) -> (i32, i32, i32) {
    %c0_i32 = arith.constant 0 : i32
    %c0_i32_0 = arith.constant 0 : i32
    %c0_i32_1 = arith.constant 0 : i32
    %c0_i32_2 = arith.constant 0 : i32
    return %c0_i32, %c0_i32_0, %c0_i32_1 : i32, i32, i32
  }
  func.func @transform_2(%arg0: i32) -> (i32, i32, i32, i32) {
    %c0_i32 = arith.constant 0 : i32
    %c0_i32_0 = arith.constant 0 : i32
    %c0_i32_1 = arith.constant 0 : i32
    %c0_i32_2 = arith.constant 0 : i32
    return %arg0, %c0_i32, %c0_i32_0, %c0_i32_1 : i32, i32, i32, i32
  }
  func.func @transform_3(%arg0: i32) -> (i32, i32, i32) {
    %c0_i32 = arith.constant 0 : i32
    %c0_i32_0 = arith.constant 0 : i32
    %c0_i32_1 = arith.constant 0 : i32
    return %arg0, %c0_i32, %c0_i32_0 : i32, i32, i32
  }
  func.func @transform_4(%arg0: i32) -> (i32, i32, i32) {
    %c0_i32 = arith.constant 0 : i32
    %c0_i32_0 = arith.constant 0 : i32
    %c0_i32_1 = arith.constant 0 : i32
    return %arg0, %c0_i32, %c0_i32_0 : i32, i32, i32
  }
}

module attributes {stable_mosaic.version = 11 : i64} {
  func.func @_bn_kernel(%arg0: i32, %arg1: memref<1x16x16x128xbf16, #tpu.memory_space<vmem>>, %arg2: memref<1x1x128xf32, #tpu.memory_space<vmem>>, %arg3: memref<1x1x128xf32, #tpu.memory_space<vmem>>, %arg4: memref<1x16x16x128xbf16, #tpu.memory_space<vmem>>) attributes {dimension_semantics = [#tpu.dimension_semantics<parallel>], iteration_bounds = array<i64: 2>, scalar_prefetch = 0 : i64, scratch_operands = 0 : i64, tpu.core_type = #tpu.core_type<tc>, window_params = [{transform_indices = @transform_0, window_bounds = array<i64: 1, 16, 16, 128>}, {pipeline_mode = #tpu.pipeline_mode<synchronous>, transform_indices = @transform_1, window_bounds = array<i64: 1, 1, 128>}, {pipeline_mode = #tpu.pipeline_mode<synchronous>, transform_indices = @transform_2, window_bounds = array<i64: 1, 1, 128>}, {transform_indices = @transform_3, window_bounds = array<i64: 1, 16, 16, 128>}]} {
    %c0 = arith.constant 0 : index
    %c0_0 = arith.constant 0 : index
    %c0_1 = arith.constant 0 : index
    %c0_2 = arith.constant 0 : index
    %0 = vector.load %arg1[%c0, %c0_0, %c0_1, %c0_2] : memref<1x16x16x128xbf16, #tpu.memory_space<vmem>>, vector<1x16x16x128xbf16>
    %1 = arith.extf %0 : vector<1x16x16x128xbf16> to vector<1x16x16x128xf32>
    %c0_3 = arith.constant 0 : index
    %c0_4 = arith.constant 0 : index
    %c0_5 = arith.constant 0 : index
    %2 = vector.load %arg2[%c0_3, %c0_4, %c0_5] : memref<1x1x128xf32, #tpu.memory_space<vmem>>, vector<1x1x128xf32>
    %3 = vector.shape_cast %2 : vector<1x1x128xf32> to vector<128xf32>
    %4 = vector.shape_cast %3 : vector<128xf32> to vector<1x1x1x128xf32>
    %5 = vector.broadcast %4 : vector<1x1x1x128xf32> to vector<1x16x16x128xf32>
    %6 = arith.mulf %1, %5 : vector<1x16x16x128xf32>
    %c0_6 = arith.constant 0 : index
    %c0_7 = arith.constant 0 : index
    %c0_8 = arith.constant 0 : index
    %7 = vector.load %arg3[%c0_6, %c0_7, %c0_8] : memref<1x1x128xf32, #tpu.memory_space<vmem>>, vector<1x1x128xf32>
    %8 = vector.shape_cast %7 : vector<1x1x128xf32> to vector<128xf32>
    %9 = vector.shape_cast %8 : vector<128xf32> to vector<1x1x1x128xf32>
    %10 = vector.broadcast %9 : vector<1x1x1x128xf32> to vector<1x16x16x128xf32>
    %11 = arith.addf %6, %10 : vector<1x16x16x128xf32>
    %12 = arith.truncf %11 : vector<1x16x16x128xf32> to vector<1x16x16x128xbf16>
    %c0_9 = arith.constant 0 : index
    %c0_10 = arith.constant 0 : index
    %c0_11 = arith.constant 0 : index
    %c0_12 = arith.constant 0 : index
    %13 = vector.load %arg4[%c0_9, %c0_10, %c0_11, %c0_12] : memref<1x16x16x128xbf16, #tpu.memory_space<vmem>>, vector<1x16x16x128xbf16>
    tpu.vector_store %arg4[%c0_9, %c0_10, %c0_11, %c0_12], %12 {strides = array<i32>} : memref<1x16x16x128xbf16, #tpu.memory_space<vmem>>, vector<1x16x16x128xbf16>,
    return
  }
  func.func @transform_0(%arg0: i32) -> (i32, i32, i32, i32) {
    %c0_i32 = arith.constant 0 : i32
    %c0_i32_0 = arith.constant 0 : i32
    %c0_i32_1 = arith.constant 0 : i32
    %c0_i32_2 = arith.constant 0 : i32
    return %arg0, %c0_i32, %c0_i32_0, %c0_i32_1 : i32, i32, i32, i32
  }
  func.func @transform_1(%arg0: i32) -> (i32, i32, i32) {
    %c0_i32 = arith.constant 0 : i32
    %c0_i32_0 = arith.constant 0 : i32
    %c0_i32_1 = arith.constant 0 : i32
    %c0_i32_2 = arith.constant 0 : i32
    return %c0_i32, %c0_i32_0, %c0_i32_1 : i32, i32, i32
  }
  func.func @transform_2(%arg0: i32) -> (i32, i32, i32) {
    %c0_i32 = arith.constant 0 : i32
    %c0_i32_0 = arith.constant 0 : i32
    %c0_i32_1 = arith.constant 0 : i32
    %c0_i32_2 = arith.constant 0 : i32
    return %c0_i32, %c0_i32_0, %c0_i32_1 : i32, i32, i32
  }
  func.func @transform_3(%arg0: i32) -> (i32, i32, i32, i32) {
    %c0_i32 = arith.constant 0 : i32
    %c0_i32_0 = arith.constant 0 : i32
    %c0_i32_1 = arith.constant 0 : i32
    %c0_i32_2 = arith.constant 0 : i32
    return %arg0, %c0_i32, %c0_i32_0, %c0_i32_1 : i32, i32, i32, i32
  }
}

</mosaic_0001>

<bundles_post_ra>
// kernel: conv_bn_forward.3
= control target key start
LH: loop header
LB: loop body
LE: loop exit
PB: predicated region body
PF: predicated region fallthrough
CT: control target
= control target key end

     0   :  { %s817_s12 = smov 0   ;;  %s917_s0 = inlined_call_operand.vmem [shape: bf16[2,16,16,128], index: 0, kind: input, shape index: {}, may-alias: {0,3}]   ;;  %s918_s1 = inlined_call_operand.vmem [shape: f32[1,1,128], index: 1, kind: input, shape index: {}]   ;;  %s919_s2 = inlined_call_operand.vmem [shape: f32[1,1,128], index: 2, kind: input, shape index: {}]   ;;  %s920_s3 = inlined_call_operand.vmem [shape: bf16[2,16,16,128], index: 3, kind: output, shape index: {}, may-alias: {0,3}]  }
   0x1 LB: > { %s528_s13 = sadd.s32 4294967295, %s795_s12   ;;  %p532_p0 = scmp.ge.s32.totalorder %s795_s12, 1  ;;  %s795_s12 = sphi %s817_s12, %s13_s12  }
   0x2   : > { %p137_p1 = scmp.lt.s32.totalorder %s795_s12, 3 }
   0x4   : > { %p138_p2 = pnand %p532_p0, %p137_p1 }
   0x5   : > { %p161_p3 = scmp.lt.s32.totalorder (!%p138_p2), %s528_s13, 1  ;;  %v537_v40 = vld [vmem:[%s918_s1] ss:$0 sm:$0xff] (!%p138_p2) }
   0x6   : > { %141 = sbr.rel (%p138_p2) target bundleno = 49 (0x31), region = 32 }
   0xd   : > { %s922_s13 = smov (!%p161_p3, %s528_s13), 1 }
   0xe   : > { %s573_s14 = sshll.u32 %s922_s13, 7 }
   0xf   : > { %s833_s17 = scalar_lea.vmem %s917_s0, %s573_s14  ;;  %s868_s24 = scalar_lea.vmem %s920_s3, %s573_s14 }
  0x10   : > { %v608_v0 = vld [vmem:[%s833_s17] sm:$0xff]   ;;  %v751_v1 = vld [vmem:[%s833_s17 + $0x8] sm:$0xff]   ;;  %v752_v2 = vld [vmem:[%s833_s17 + $0x10] sm:$0xff]  }
  0x11   : > { %v609_v3 = vunpack.c.l.bf16 %v608_v0  ;;  %v610_v4 = vunpack.c.h.bf16 %v608_v0  ;;  %v613_v5 = vunpack.c.l.bf16 %v751_v1  ;;  %v614_v6 = vunpack.c.h.bf16 %v751_v1  ;;  %v753_v7 = vld [vmem:[%s833_s17 + $0x18] sm:$0xff]   ;;  %v754_v8 = vld [vmem:[%s833_s17 + $0x20] sm:$0xff]   ;;  %v755_v9 = vld [vmem:[%s833_s17 + $0x28] sm:$0xff]  }
  0x12   : > { %v617_v10 = vunpack.c.l.bf16 %v752_v2  ;;  %v618_v11 = vunpack.c.h.bf16 %v752_v2  ;;  %v621_v12 = vunpack.c.l.bf16 %v753_v7  ;;  %v622_v13 = vunpack.c.h.bf16 %v753_v7  ;;  %v756_v14 = vld [vmem:[%s833_s17 + $0x30] sm:$0xff]   ;;  %v757_v15 = vld [vmem:[%s833_s17 + $0x38] sm:$0xff]   ;;  %v758_v16 = vld [vmem:[%s833_s17 + $0x40] sm:$0xff]  }
  0x13   : > { %v625_v17 = vunpack.c.l.bf16 %v754_v8  ;;  %v626_v18 = vunpack.c.h.bf16 %v754_v8  ;;  %v629_v19 = vunpack.c.l.bf16 %v755_v9  ;;  %v630_v20 = vunpack.c.h.bf16 %v755_v9  ;;  %v759_v21 = vld [vmem:[%s833_s17 + $0x48] sm:$0xff]   ;;  %v760_v22 = vld [vmem:[%s833_s17 + $0x50] sm:$0xff]   ;;  %v761_v23 = vld [vmem:[%s833_s17 + $0x58] sm:$0xff]  }
  0x14   : > { %v633_v24 = vunpack.c.l.bf16 %v756_v14  ;;  %v634_v25 = vunpack.c.h.bf16 %v756_v14  ;;  %v637_v26 = vunpack.c.l.bf16 %v757_v15  ;;  %v638_v27 = vunpack.c.h.bf16 %v757_v15  ;;  %v762_v28 = vld [vmem:[%s833_s17 + $0x60] sm:$0xff]   ;;  %v763_v29 = vld [vmem:[%s833_s17 + $0x68] sm:$0xff]   ;;  %v764_v34 = vld [vmem:[%s833_s17 + $0x70] sm:$0xff]  }
  0x15   : > { %v641_v30 = vunpack.c.l.bf16 %v758_v16  ;;  %v642_v31 = vunpack.c.h.bf16 %v758_v16  ;;  %v645_v32 = vunpack.c.l.bf16 %v759_v21  ;;  %v646_v33 = vunpack.c.h.bf16 %v759_v21  ;;  %v765_v35 = vld [vmem:[%s833_s17 + $0x78] sm:$0xff]   ;;  %v857_v9 = vld [vmem:[%s919_s2] ss:$0 sm:$0xff] }
  0x16   : > { %v649_v36 = vunpack.c.l.bf16 %v760_v22  ;;  %v650_v37 = vunpack.c.h.bf16 %v760_v22  ;;  %v653_v38 = vunpack.c.l.bf16 %v761_v23  ;;  %v654_v39 = vunpack.c.h.bf16 %v761_v23 }
  0x17   : > { %v657_v41 = vunpack.c.l.bf16 %v762_v28  ;;  %v658_v42 = vunpack.c.h.bf16 %v762_v28  ;;  %v661_v43 = vunpack.c.l.bf16 %v763_v29  ;;  %v662_v44 = vunpack.c.h.bf16 %v763_v29 }
  0x18   : > { %v665_v45 = vunpack.c.l.bf16 %v764_v34  ;;  %v666_v46 = vunpack.c.h.bf16 %v764_v34  ;;  %v669_v47 = vunpack.c.l.bf16 %v765_v35  ;;  %v670_v48 = vunpack.c.h.bf16 %v765_v35 }
  0x19   : > { %v242_v49 = vmul.f32 %v609_v3, %v537_v40  ;;  %v243_v50 = vmul.f32 %v610_v4, %v537_v40  ;;  %v244_v51 = vmul.f32 %v613_v5, %v537_v40  ;;  %v245_v52 = vmul.f32 %v614_v6, %v537_v40 }
  0x1a   : > { %v246_v53 = vmul.f32 %v617_v10, %v537_v40  ;;  %v247_v54 = vmul.f32 %v618_v11, %v537_v40  ;;  %v248_v55 = vmul.f32 %v621_v12, %v537_v40  ;;  %v249_v56 = vmul.f32 %v622_v13, %v537_v40 }
  0x1b   : > { %v250_v57 = vmul.f32 %v625_v17, %v537_v40  ;;  %v251_v58 = vmul.f32 %v626_v18, %v537_v40  ;;  %v252_v59 = vmul.f32 %v629_v19, %v537_v40  ;;  %v253_v60 = vmul.f32 %v630_v20, %v537_v40 }
  0x1c   : > { %v254_v61 = vmul.f32 %v633_v24, %v537_v40  ;;  %v255_v62 = vmul.f32 %v634_v25, %v537_v40  ;;  %v256_v63 = vmul.f32 %v637_v26, %v537_v40  ;;  %v257_v0 = vmul.f32 %v638_v27, %v537_v40 }
  0x1d   : > { %v258_v1 = vmul.f32 %v641_v30, %v537_v40  ;;  %v259_v2 = vmul.f32 %v642_v31, %v537_v40  ;;  %v260_v7 = vmul.f32 %v645_v32, %v537_v40  ;;  %v261_v8 = vmul.f32 %v646_v33, %v537_v40 }
  0x1e   : > { %v262_v3 = vmul.f32 %v649_v36, %v537_v40  ;;  %v263_v4 = vmul.f32 %v650_v37, %v537_v40  ;;  %v264_v5 = vmul.f32 %v653_v38, %v537_v40  ;;  %v265_v6 = vmul.f32 %v654_v39, %v537_v40 }
  0x1f   : > { %v266_v10 = vmul.f32 %v657_v41, %v537_v40  ;;  %v267_v11 = vmul.f32 %v658_v42, %v537_v40  ;;  %v268_v12 = vmul.f32 %v661_v43, %v537_v40  ;;  %v269_v13 = vmul.f32 %v662_v44, %v537_v40 }
  0x20   : > { %v270_v14 = vmul.f32 %v665_v45, %v537_v40  ;;  %v271_v15 = vmul.f32 %v666_v46, %v537_v40  ;;  %v272_v16 = vmul.f32 %v669_v47, %v537_v40  ;;  %v273_v17 = vmul.f32 %v670_v48, %v537_v40 }
  0x21   : > { %v281_v18 = vadd.f32 %v857_v9, %v242_v49  ;;  %v282_v19 = vadd.f32 %v857_v9, %v243_v50  ;;  %v283_v20 = vadd.f32 %v857_v9, %v244_v51  ;;  %v284_v21 = vadd.f32 %v857_v9, %v245_v52 }
  0x22   : > { %v285_v22 = vadd.f32 %v857_v9, %v246_v53  ;;  %v286_v23 = vadd.f32 %v857_v9, %v247_v54  ;;  %v287_v24 = vadd.f32 %v857_v9, %v248_v55  ;;  %v288_v25 = vadd.f32 %v857_v9, %v249_v56 }
  0x23   : > { %v674_v26 = vpack.c.bf16 %v282_v19, %v281_v18  ;;  %v679_v27 = vpack.c.bf16 %v284_v21, %v283_v20  ;;  %v289_v28 = vadd.f32 %v857_v9, %v250_v57  ;;  %v290_v29 = vadd.f32 %v857_v9, %v251_v58 }
  0x24   : > { %v684_v30 = vpack.c.bf16 %v286_v23, %v285_v22  ;;  %v689_v31 = vpack.c.bf16 %v288_v25, %v287_v24  ;;  %v291_v32 = vadd.f32 %v857_v9, %v252_v59  ;;  %v292_v33 = vadd.f32 %v857_v9, %v253_v60 }
  0x25   : > { %675 = vst [vmem:[%s868_s24] sm:$0xff] %v674_v26   ;;  %766 = vst [vmem:[%s868_s24 + $0x8] sm:$0xff] %v679_v27   ;;  %v694_v34 = vpack.c.bf16 %v290_v29, %v289_v28  ;;  %v293_v35 = vadd.f32 %v857_v9, %v254_v61  ;;  %v294_v36 = vadd.f32 %v857_v9, %v255_v62 }
  0x26   : > { %v295_v37 = vadd.f32 %v857_v9, %v256_v63  ;;  %767 = vst [vmem:[%s868_s24 + $0x10] sm:$0xff] %v684_v30   ;;  %768 = vst [vmem:[%s868_s24 + $0x18] sm:$0xff] %v689_v31   ;;  %v699_v38 = vpack.c.bf16 %v292_v33, %v291_v32  ;;  %v296_v39 = vadd.f32 %v857_v9, %v257_v0 }
  0x27   : > { %v297_v40 = vadd.f32 %v857_v9, %v258_v1  ;;  %v298_v41 = vadd.f32 %v857_v9, %v259_v2  ;;  %769 = vst [vmem:[%s868_s24 + $0x20] sm:$0xff] %v694_v34   ;;  %v704_v42 = vpack.c.bf16 %v294_v36, %v293_v35  ;;  %v299_v43 = vadd.f32 %v857_v9, %v260_v7 }
  0x28   : > { %v300_v44 = vadd.f32 %v857_v9, %v261_v8  ;;  %v301_v45 = vadd.f32 %v857_v9, %v262_v3  ;;  %770 = vst [vmem:[%s868_s24 + $0x28] sm:$0xff] %v699_v38   ;;  %v709_v46 = vpack.c.bf16 %v296_v39, %v295_v37  ;;  %v302_v48 = vadd.f32 %v857_v9, %v263_v4 }
  0x29   : > { %v714_v47 = vpack.c.bf16 %v298_v41, %v297_v40  ;;  %v303_v49 = vadd.f32 %v857_v9, %v264_v5  ;;  %771 = vst [vmem:[%s868_s24 + $0x30] sm:$0xff] %v704_v42   ;;  %v304_v51 = vadd.f32 %v857_v9, %v265_v6  ;;  %v305_v52 = vadd.f32 %v857_v9, %v266_v10 }
  0x2a   : > { %v719_v50 = vpack.c.bf16 %v300_v44, %v299_v43  ;;  %v306_v53 = vadd.f32 %v857_v9, %v267_v11  ;;  %772 = vst [vmem:[%s868_s24 + $0x38] sm:$0xff] %v709_v46   ;;  %v724_v54 = vpack.c.bf16 %v302_v48, %v301_v45  ;;  %v307_v55 = vadd.f32 %v857_v9, %v268_v12 }
  0x2b   : > { %773 = vst [vmem:[%s868_s24 + $0x40] sm:$0xff] %v714_v47   ;;  %v308_v56 = vadd.f32 %v857_v9, %v269_v13  ;;  %v309_v57 = vadd.f32 %v857_v9, %v270_v14  ;;  %v729_v58 = vpack.c.bf16 %v304_v51, %v303_v49  ;;  %v310_v60 = vadd.f32 %v857_v9, %v271_v15 }
  0x2c   : > { %774 = vst [vmem:[%s868_s24 + $0x48] sm:$0xff] %v719_v50   ;;  %v734_v59 = vpack.c.bf16 %v306_v53, %v305_v52  ;;  %v311_v61 = vadd.f32 %v857_v9, %v272_v16  ;;  %775 = vst [vmem:[%s868_s24 + $0x50] sm:$0xff] %v724_v54   ;;  %v312_v63 = vadd.f32 %v857_v9, %v273_v17 }
  0x2d   : > { %v739_v62 = vpack.c.bf16 %v308_v56, %v307_v55  ;;  %776 = vst [vmem:[%s868_s24 + $0x58] sm:$0xff] %v729_v58   ;;  %v744_v0 = vpack.c.bf16 %v310_v60, %v309_v57 }
  0x2e   : > { %777 = vst [vmem:[%s868_s24 + $0x60] sm:$0xff] %v734_v59   ;;  %v749_v1 = vpack.c.bf16 %v312_v63, %v311_v61 }
  0x2f   : > { %778 = vst [vmem:[%s868_s24 + $0x68] sm:$0xff] %v739_v62   ;;  %779 = vst [vmem:[%s868_s24 + $0x70] sm:$0xff] %v744_v0  }
  0x30   : > { %780 = vst [vmem:[%s868_s24 + $0x78] sm:$0xff] %v749_v1  }
  0x31 PF: > { %s13_s12 = sadd.s32 1, %s795_s12  }
  0x32   : > { %p10_p4 = scmp.ge.s32.totalorder %s13_s12, 4  }
  0x34   :  { %12 = sbr.rel (!%p10_p4) target bundleno = 1 (0x1), region = 62 }

// kernel: conv_bn_forward.2
= control target key start
LH: loop header
LB: loop body
LE: loop exit
PB: predicated region body
PF: predicated region fallthrough
CT: control target
= control target key end

     0   :  { %s3606_s15 = smov 0   ;;  %s3915_s0 = inlined_call_operand.vmem [shape: bf16[2,20,16,128], index: 0, kind: input, shape index: {}]   ;;  %s3916_s1 = inlined_call_operand.vmem [shape: bf16[5,128,128], index: 1, kind: input, shape index: {}]   ;;  %s3917_s2 = inlined_call_operand.vmem [shape: bf16[2,16,16,128], index: 2, kind: output, shape index: {0}]   ;;  %s3918_s3 = inlined_call_operand.vmem [shape: f32[2,1,128], index: 3, kind: output, shape index: {1}]   ;;  %s3919_s4 = inlined_call_operand.vmem [shape: f32[2,1,128], index: 4, kind: output, shape index: {2}]  }
   0x1 LB: > { %s2458_s16 = sadd.s32 4294967295, %s3579_s15   ;;  %p2462_p0 = scmp.ge.s32.totalorder %s3579_s15, 1  ;;  %s3579_s15 = sphi %s3606_s15, %s15_s15  }
   0x2   : > { %p167_p1 = scmp.lt.s32.totalorder %s3579_s15, 3 }
   0x4   : > { %p168_p2 = pnand %p2462_p0, %p167_p1 }
   0x5   : > { %v3453_v0 = vld [vmem:[%s3916_s1 + $0x40] sm:$0xff] (!%p168_p2)   ;;  %p199_p3 = scmp.lt.s32.totalorder (!%p168_p2), %s2458_s16, 1  ;;  %v3455_v2 = vld [vmem:[%s3916_s1 + $0x48] sm:$0xff] (!%p168_p2)   ;;  %v3457_v4 = vld [vmem:[%s3916_s1 + $0x50] sm:$0xff] (!%p168_p2)  }
   0x6   : > { %171 = sbr.rel (%p168_p2) target bundleno = 429 (0x1ad), region = 28  ;;  %v3620_v1 = vld [vmem:[%s3916_s1 + $0x80] sm:$0xff] (!%p168_p2)   ;;  %3060 = vmatprep.subr.bf16.mxu1 (!%p168_p2), %v3453_v0  ;;  %v3629_v3 = vld [vmem:[%s3916_s1 + $0x88] sm:$0xff] (!%p168_p2)   ;;  %v3639_v5 = vld [vmem:[%s3916_s1 + $0x90] sm:$0xff] (!%p168_p2)  }
   0x7   : > { %3156 = vmatprep.subr.bf16.mxu0 (!%p168_p2), %v3620_v1  ;;  %3061 = vmatpush3.bf16.msra.mxu1 (!%p168_p2), %v3453_v0  ;;  %v3459_v6 = vld [vmem:[%s3916_s1 + $0x58] sm:$0xff] (!%p168_p2)   ;;  %v3461_v8 = vld [vmem:[%s3916_s1 + $0x60] sm:$0xff] (!%p168_p2)   ;;  %v3463_v10 = vld [vmem:[%s3916_s1 + $0x68] sm:$0xff] (!%p168_p2)  }
   0x8   : > { %3157 = vmatpush3.bf16.msra.mxu0 (!%p168_p2), %v3620_v1  ;;  %3062 = vmatprep.subr.bf16.mxu1 (!%p168_p2), %v3455_v2  ;;  %v3651_v7 = vld [vmem:[%s3916_s1 + $0x98] sm:$0xff] (!%p168_p2)   ;;  %v3662_v9 = vld [vmem:[%s3916_s1 + $0xa0] sm:$0xff] (!%p168_p2)   ;;  %v3675_v11 = vld [vmem:[%s3916_s1 + $0xa8] sm:$0xff] (!%p168_p2)  }
   0x9   : > { %3158 = vmatprep.subr.bf16.mxu0 (!%p168_p2), %v3629_v3  ;;  %v3465_v14 = vld [vmem:[%s3916_s1 + $0x70] sm:$0xff] (!%p168_p2)   ;;  %v3467_v16 = vld [vmem:[%s3916_s1 + $0x78] sm:$0xff] (!%p168_p2)   ;;  %v3472_v19 = vld [vmem:[%s3916_s1] sm:$0xff] (!%p168_p2)  }
   0xa   : > { %v3689_v15 = vld [vmem:[%s3916_s1 + $0xb0] sm:$0xff] (!%p168_p2)   ;;  %v3699_v17 = vld [vmem:[%s3916_s1 + $0xb8] sm:$0xff] (!%p168_p2)   ;;  %v3474_v20 = vld [vmem:[%s3916_s1 + $0xc0] sm:$0xff] (!%p168_p2)  }
   0xb   : > { %3063 = vmatpush3.bf16.msra.mxu1 (!%p168_p2), %v3455_v2  ;;  %v3475_v22 = vld [vmem:[%s3916_s1 + $0xc8] sm:$0xff] (!%p168_p2)   ;;  %v3486_v27 = vld [vmem:[%s3916_s1 + $0x10] sm:$0xff] (!%p168_p2)   ;;  %v3482_v32 = vld [vmem:[%s3916_s1 + $0xd8] sm:$0xff] (!%p168_p2)  }
   0xc   : > { %3159 = vmatpush3.bf16.msra.mxu0 (!%p168_p2), %v3629_v3  ;;  %3064 = vmatprep.subr.bf16.mxu1 (!%p168_p2), %v3457_v4  ;;  %v3479_v25 = vld [vmem:[%s3916_s1 + $0x8] sm:$0xff] (!%p168_p2)   ;;  %v3481_v28 = vld [vmem:[%s3916_s1 + $0xd0] sm:$0xff] (!%p168_p2)   ;;  %v3493_v33 = vld [vmem:[%s3916_s1 + $0x18] sm:$0xff] (!%p168_p2)  }
   0xd   : > { %s3921_s16 = smov (!%p199_p3, %s2458_s16), 1  ;;  %3160 = vmatprep.subr.bf16.mxu0 %v3639_v5  ;;  %v3488_v36 = vld [vmem:[%s3916_s1 + $0xe0] sm:$0xff]   ;;  %v3489_v40 = vld [vmem:[%s3916_s1 + $0xe8] sm:$0xff]   ;;  %v3495_v42 = vld [vmem:[%s3916_s1 + $0xf0] sm:$0xff]  }
   0xe   : > { %s3444_s7 = smul.u32 160, %s3921_s16  ;;  %v3500_v38 = vld [vmem:[%s3916_s1 + $0x20] sm:$0xff]   ;;  %v3506_v43 = vld [vmem:[%s3916_s1 + $0x28] sm:$0xff]   ;;  %v3496_v47 = vld [vmem:[%s3916_s1 + $0xf8] sm:$0xff]   ;;  %s211_s10 = scalar_lea.vmem %s3918_s3, %s3921_s16 }
   0xf   : > { %3065 = vmatpush3.bf16.msra.mxu1 %v3457_v4  ;;  %v3512_v48 = vld [vmem:[%s3916_s1 + $0x30] sm:$0xff]   ;;  %v3502_v51 = vld [vmem:[%s3916_s1 + $0x100] sm:$0xff]   ;;  %v3508_v54 = vld [vmem:[%s3916_s1 + $0x108] sm:$0xff]   ;;  %s214_s13 = scalar_lea.vmem %s3919_s4, %s3921_s16 }
  0x10   : > { %3161 = vmatpush3.bf16.msra.mxu0 %v3639_v5  ;;  %3066 = vmatprep.subr.bf16.mxu1 %v3459_v6  ;;  %s3667_s14 = scalar_lea.vmem %s3915_s0, %s3444_s7  ;;  %v3518_v55 = vld [vmem:[%s3916_s1 + $0x38] sm:$0xff]   ;;  %v3514_v57 = vld [vmem:[%s3916_s1 + $0x110] sm:$0xff]   ;;  %v3525_v63 = vld [vmem:[%s3916_s1 + $0x120] sm:$0xff]  }
  0x11   : > { %3162 = vmatprep.subr.bf16.mxu0 %v3651_v7  ;;  %v3469_v12 = vld [vmem:[%s3667_s14 + $0x8] sm:$0xff]   ;;  %v3470_v13 = vld [vmem:[%s3667_s14 + $0x10] sm:$0xff]   ;;  %v3473_v21 = vld [vmem:[%s3667_s14 + $0x18] sm:$0xff]  }
  0x12   : > { %3076 = vmatprep.mubr.bf16.mxu1 %v3469_v12  ;;  %3172 = vmatprep.mubr.bf16.mxu0 %v3470_v13  ;;  %v3471_v18 = vld [vmem:[%s3667_s14 + $0x10] sm:$0xff]   ;;  %v3476_v23 = vld [vmem:[%s3667_s14 + $0x18] sm:$0xff]   ;;  %v3477_v24 = vld [vmem:[%s3667_s14 + $0x20] sm:$0xff]  }
  0x13   : > { %3067 = vmatpush3.bf16.msra.mxu1 %v3459_v6  ;;  %v3478_v26 = vld [vmem:[%s3667_s14 + $0x20] sm:$0xff]   ;;  %v3480_v29 = vld [vmem:[%s3667_s14 + $0x28] sm:$0xff]   ;;  %v3484_v31 = vld [vmem:[%s3667_s14 + $0x30] sm:$0xff]  }
  0x14   : > { %3163 = vmatpush3.bf16.msra.mxu0 %v3651_v7  ;;  %3068 = vmatprep.subr.bf16.mxu1 %v3461_v8  ;;  %v3483_v30 = vld [vmem:[%s3667_s14 + $0x28] sm:$0xff]   ;;  %v3485_v34 = vld [vmem:[%s3667_s14 + $0x30] sm:$0xff]   ;;  %v3487_v35 = vld [vmem:[%s3667_s14 + $0x38] sm:$0xff]  }
  0x15   : > { %3164 = vmatprep.subr.bf16.mxu0 %v3662_v9  ;;  %v3490_v37 = vld [vmem:[%s3667_s14 + $0x38] sm:$0xff]   ;;  %v3491_v39 = vld [vmem:[%s3667_s14 + $0x40] sm:$0xff]   ;;  %v3494_v44 = vld [vmem:[%s3667_s14 + $0x48] sm:$0xff]  }
  0x16   : > { %v3492_v41 = vld [vmem:[%s3667_s14 + $0x40] sm:$0xff]   ;;  %v3497_v45 = vld [vmem:[%s3667_s14 + $0x48] sm:$0xff]   ;;  %v3498_v46 = vld [vmem:[%s3667_s14 + $0x18] sm:$0xff]  }
  0x17   : > { %3069 = vmatpush3.bf16.msra.mxu1 %v3461_v8  ;;  %v3499_v49 = vld [vmem:[%s3667_s14 + $0x50] sm:$0xff]   ;;  %v3501_v50 = vld [vmem:[%s3667_s14 + $0x20] sm:$0xff]   ;;  %v3503_v52 = vld [vmem:[%s3667_s14 + $0x58] sm:$0xff]  }
  0x18   : > { %3165 = vmatpush3.bf16.msra.mxu0 %v3662_v9  ;;  %3070 = vmatprep.subr.bf16.mxu1 %v3463_v10  ;;  %v3504_v53 = vld [vmem:[%s3667_s14 + $0x28] sm:$0xff]   ;;  %v3505_v56 = vld [vmem:[%s3667_s14 + $0x60] sm:$0xff]   ;;  %v3507_v58 = vld [vmem:[%s3667_s14 + $0x30] sm:$0xff]  }
  0x19   : > { %3166 = vmatprep.subr.bf16.mxu0 %v3675_v11  ;;  %v3509_v59 = vld [vmem:[%s3667_s14 + $0x68] sm:$0xff]   ;;  %v3510_v60 = vld [vmem:[%s3667_s14 + $0x38] sm:$0xff]   ;;  %v3511_v62 = vld [vmem:[%s3667_s14 + $0x70] sm:$0xff]  }
  0x1a   : > { %v3520_v61 = vld [vmem:[%s3916_s1 + $0x118] sm:$0xff]   ;;  %v3513_v0 = vld [vmem:[%s3667_s14 + $0x40] sm:$0xff]   ;;  %v3516_v4 = vld [vmem:[%s3667_s14 + $0x48] sm:$0xff]  }
  0x1b   : > { %3071 = vmatpush3.bf16.msra.mxu1 %v3463_v10  ;;  %v3515_v2 = vld [vmem:[%s3667_s14 + $0x78] sm:$0xff]   ;;  %v3530_v6 = vld [vmem:[%s3916_s1 + $0x128] sm:$0xff]   ;;  %v3517_v8 = vld [vmem:[%s3667_s14 + $0x80] sm:$0xff]  }
  0x1c   : > { %3167 = vmatpush3.bf16.msra.mxu0 %v3675_v11  ;;  %3072 = vmatprep.subr.bf16.mxu1 %v3465_v14  ;;  %v3535_v10 = vld [vmem:[%s3916_s1 + $0x130] sm:$0xff]   ;;  %v3521_v13 = vld [vmem:[%s3667_s14] sm:$0xff]  }
  0x1d   : > { %3168 = vmatprep.subr.bf16.mxu0 %v3689_v15  ;;  %v3519_v12 = vld [vmem:[%s3667_s14 + $0x50] sm:$0xff]  }
  0x1f   : > { %3073 = vmatpush3.bf16.msra.mxu1 %v3465_v14  ;;  %v3522_v14 = vld [vmem:[%s3667_s14 + $0x58] sm:$0xff]  }
  0x20   : > { %3169 = vmatpush3.bf16.msra.mxu0 %v3689_v15  ;;  %3074 = vmatprep.subr.bf16.mxu1 %v3467_v16 }
  0x21   : > { %3170 = vmatprep.subr.bf16.mxu0 %v3699_v17 }
  0x23   : > { %3075 = vmatpush3.bf16.msra.mxu1 %v3467_v16  ;;  %v3540_v16 = vld [vmem:[%s3916_s1 + $0x138] sm:$0xff]  }
  0x24   : > { %3171 = vmatpush3.bf16.msra.mxu0 %v3699_v17  ;;  %3108 = vmatprep.subr.bf16.mxu1 %v3472_v19 }
  0x25   : > { %3204 = vmatprep.subr.bf16.mxu0 %v3474_v20 }
  0x26   : > { %3077 = vmatmul.mubr.bf16.vlgmr.msra.gmra.mrb[0].mxu1 %v3471_v18  ;;  %v3523_v18 = vld [vmem:[%s3667_s14 + $0x8] sm:$0xff]  }
  0x27   : > { %3173 = vmatmul.mubr.bf16.vlgmr.msra.gmra.mrb[0].mxu0 %v3473_v21  ;;  %3109 = vmatpush3.bf16.msra.mxu1 %v3472_v19  ;;  %v3524_v19 = vld [vmem:[%s3667_s14 + $0x60] sm:$0xff]   ;;  %v3527_v21 = vld [vmem:[%s3667_s14 + $0x68] sm:$0xff]  }
  0x28   : > { %3205 = vmatpush3.bf16.msra.mxu0 %v3474_v20  ;;  %3080 = vmatprep.mubr.bf16.mxu1 %v3476_v23  ;;  %v3526_v20 = vld [vmem:[%s3667_s14 + $0x10] sm:$0xff]  }
  0x29   : > { %3206 = vmatprep.subr.bf16.mxu0 %v3475_v22  ;;  %3176 = vmatprep.mubr.bf16.mxu0 %v3477_v24  ;;  %v3529_v23 = vld [vmem:[%s3667_s14 + $0x70] sm:$0xff]   ;;  %v3531_v24 = vld [vmem:[%s3667_s14 + $0x20] sm:$0xff]  }
  0x2a   : > { %3110 = vmatprep.subr.bf16.mxu1 %v3479_v25 }
  0x2b   : > { %3111 = vmatpush3.bf16.msra.mxu1 %v3479_v25  ;;  %v3532_v25 = vld [vmem:[%s3667_s14 + $0x78] sm:$0xff]  }
  0x2c   : > { %3207 = vmatpush3.bf16.msra.mxu0 %v3475_v22  ;;  %3112 = vmatprep.subr.bf16.mxu1 %v3486_v27  ;;  %v3528_v22 = vld [vmem:[%s3667_s14 + $0x18] sm:$0xff]  }
  0x2d   : > { %3208 = vmatprep.subr.bf16.mxu0 %v3481_v28 }
  0x2e   : > { %3081 = vmatmul.mubr.bf16.gmra.mrb[4].mxu1 %v3478_v26  ;;  %v3534_v26 = vld [vmem:[%s3667_s14 + $0x80] sm:$0xff]  }
  0x2f   : > { %3177 = vmatmul.mubr.bf16.gmra.mrb[4].mxu0 %v3480_v29  ;;  %3084 = vmatprep.mubr.bf16.mxu1 %v3483_v30  ;;  %v3541_v29 = vld [vmem:[%s3667_s14 + $0x40] sm:$0xff]  }
  0x30   : > { %3209 = vmatpush3.bf16.msra.mxu0 %v3481_v28  ;;  %3180 = vmatprep.mubr.bf16.mxu0 %v3484_v31  ;;  %v3539_v28 = vld [vmem:[%s3667_s14 + $0x90] sm:$0xff]   ;;  %v3542_v30 = vld [vmem:[%s3667_s14 + $0x20] sm:$0xff]  }
  0x31   : > { %3210 = vmatprep.subr.bf16.mxu0 %v3482_v32  ;;  %3113 = vmatpush3.bf16.msra.mxu1 %v3486_v27  ;;  %v3536_v27 = vld [vmem:[%s3667_s14 + $0x30] sm:$0xff]  }
  0x32   : > { %3114 = vmatprep.subr.bf16.mxu1 %v3493_v33  ;;  %v3545_v31 = vld [vmem:[%s3667_s14 + $0x50] sm:$0xff]  }
  0x34   : > { %3211 = vmatpush3.bf16.msra.mxu0 %v3482_v32  ;;  %v3547_v32 = vld [vmem:[%s3667_s14 + $0x58] sm:$0xff]  }
  0x35   : > { %3212 = vmatprep.subr.bf16.mxu0 %v3488_v36  ;;  %3115 = vmatpush3.bf16.msra.mxu1 %v3493_v33  ;;  %v3548_v33 = vld [vmem:[%s3667_s14 + $0x38] sm:$0xff]  }
  0x36   : > { %3085 = vmatmul.mubr.bf16.gmra.mrb[8].mxu1 %v3485_v34  ;;  %3116 = vmatprep.subr.bf16.mxu1 %v3500_v38  ;;  %v3550_v34 = vld [vmem:[%s3667_s14 + $0x40] sm:$0xff]  }
  0x37   : > { %3181 = vmatmul.mubr.bf16.gmra.mrb[8].mxu0 %v3487_v35  ;;  %3088 = vmatprep.mubr.bf16.mxu1 %v3490_v37  ;;  %v3551_v35 = vld [vmem:[%s3667_s14 + $0x68] sm:$0xff]   ;;  %v3554_v37 = vld [vmem:[%s3667_s14 + $0x50] sm:$0xff]  }
  0x38   : > { %3213 = vmatpush3.bf16.msra.mxu0 %v3488_v36  ;;  %3184 = vmatprep.mubr.bf16.mxu0 %v3491_v39  ;;  %v3553_v36 = vld [vmem:[%s3667_s14 + $0x70] sm:$0xff]   ;;  %v3556_v39 = vld [vmem:[%s3667_s14 + $0x58] sm:$0xff]  }
  0x39   : > { %3214 = vmatprep.subr.bf16.mxu0 %v3489_v40  ;;  %3117 = vmatpush3.bf16.msra.mxu1 %v3500_v38  ;;  %v3555_v38 = vld [vmem:[%s3667_s14 + $0x78] sm:$0xff]  }
  0x3a   : > { %3118 = vmatprep.subr.bf16.mxu1 %v3506_v43 }
  0x3c   : > { %3215 = vmatpush3.bf16.msra.mxu0 %v3489_v40  ;;  %v3557_v40 = vld [vmem:[%s3667_s14 + $0x50] sm:$0xff]  }
  0x3d   : > { %3216 = vmatprep.subr.bf16.mxu0 %v3495_v42  ;;  %3119 = vmatpush3.bf16.msra.mxu1 %v3506_v43  ;;  %v3560_v43 = vld [vmem:[%s3667_s14 + $0x68] sm:$0xff]  }
  0x3e   : > { %3089 = vmatmul.mubr.bf16.gmra.mrb[12].mxu1 %v3492_v41  ;;  %3120 = vmatprep.subr.bf16.mxu1 %v3512_v48  ;;  %v3558_v41 = vld [vmem:[%s3667_s14 + $0x60] sm:$0xff]  }
  0x3f   : > { %3185 = vmatmul.mubr.bf16.gmra.mrb[12].mxu0 %v3494_v44  ;;  %3092 = vmatprep.mubr.bf16.mxu1 %v3497_v45  ;;  %v3561_v44 = vld [vmem:[%s3667_s14 + $0x60] sm:$0xff]   ;;  %v3562_v45 = vld [vmem:[%s3667_s14 + $0x70] sm:$0xff]  }
  0x40   : > { %3217 = vmatpush3.bf16.msra.mxu0 %v3495_v42  ;;  %3220 = vmatprep.mubr.bf16.mxu0 %v3498_v46  ;;  %v3559_v42 = vld [vmem:[%s3667_s14 + $0x58] sm:$0xff]   ;;  %v3563_v46 = vld [vmem:[%s3667_s14 + $0x68] sm:$0xff]  }
  0x41   : > { %3218 = vmatprep.subr.bf16.mxu0 %v3496_v47  ;;  %3121 = vmatpush3.bf16.msra.mxu1 %v3512_v48  ;;  %v3565_v48 = vld [vmem:[%s3667_s14 + $0x70] sm:$0xff]  }
  0x42   : > { %3122 = vmatprep.subr.bf16.mxu1 %v3518_v55 }
  0x44   : > { %3219 = vmatpush3.bf16.msra.mxu0 %v3496_v47  ;;  %v3564_v47 = vld [vmem:[%s3667_s14 + $0x78] sm:$0xff]  }
  0x45   : > { %3252 = vmatprep.subr.bf16.mxu0 %v3502_v51  ;;  %3123 = vmatpush3.bf16.msra.mxu1 %v3518_v55  ;;  %v3572_v55 = vld [vmem:[%s3667_s14 + $0x98] sm:$0xff]  }
  0x46   : > { %3093 = vmatmul.mubr.bf16.gmra.mrb[16].mxu1 %v3499_v49  ;;  %3300 = vmatprep.subr.bf16.mxu1 %v3620_v1  ;;  %v3566_v49 = vld [vmem:[%s3667_s14 + $0x80] sm:$0xff]  }
  0x47   : > { %3221 = vmatmul.mubr.bf16.vlgmr.msra.gmra.mrb[0].mxu0 %v3501_v50  ;;  %3096 = vmatprep.mubr.bf16.mxu1 %v3503_v52  ;;  %v3567_v50 = vld [vmem:[%s3667_s14 + $0x78] sm:$0xff]   ;;  %v3569_v52 = vld [vmem:[%s3667_s14 + $0x80] sm:$0xff]  }
  0x48   : > { %3253 = vmatpush3.bf16.msra.mxu0 %v3502_v51  ;;  %3224 = vmatprep.mubr.bf16.mxu0 %v3504_v53  ;;  %v3568_v51 = vld [vmem:[%s3667_s14 + $0x88] sm:$0xff]   ;;  %v3570_v53 = vld [vmem:[%s3667_s14 + $0x90] sm:$0xff]  }
  0x49   : > { %3254 = vmatprep.subr.bf16.mxu0 %v3508_v54 }
  0x4c   : > { %3255 = vmatpush3.bf16.msra.mxu0 %v3508_v54  ;;  %v3571_v54 = vld [vmem:[%s3667_s14 + $0x88] sm:$0xff]  }
  0x4d   : > { %3256 = vmatprep.subr.bf16.mxu0 %v3514_v57 }
  0x4e   : > { %3097 = vmatmul.mubr.bf16.gmra.mrb[20].mxu1 %v3505_v56 }
  0x4f   : > { %3225 = vmatmul.mubr.bf16.gmra.mrb[4].mxu0 %v3507_v58  ;;  %3100 = vmatprep.mubr.bf16.mxu1 %v3509_v59 }
  0x50   : > { %3228 = vmatprep.mubr.bf16.mxu0 %v3510_v60  ;;  %3257 = vmatpush3.bf16.msra.mxu0 %v3514_v57 }
  0x51   : > { %3258 = vmatprep.subr.bf16.mxu0 %v3520_v61 }
  0x54   : > { %3259 = vmatpush3.bf16.msra.mxu0 %v3520_v61 }
  0x55   : > { %3260 = vmatprep.subr.bf16.mxu0 %v3525_v63 }
  0x56   : > { %3101 = vmatmul.mubr.bf16.gmra.mrb[24].mxu1 %v3511_v62 }
  0x57   : > { %3229 = vmatmul.mubr.bf16.gmra.mrb[8].mxu0 %v3513_v0  ;;  %3104 = vmatprep.mubr.bf16.mxu1 %v3515_v2 }
  0x58   : > { %3232 = vmatprep.mubr.bf16.mxu0 %v3516_v4  ;;  %3261 = vmatpush3.bf16.msra.mxu0 %v3525_v63 }
  0x59   : > { %3262 = vmatprep.subr.bf16.mxu0 %v3530_v6 }
  0x5c   : > { %3263 = vmatpush3.bf16.msra.mxu0 %v3530_v6 }
  0x5d   : > { %3264 = vmatprep.subr.bf16.mxu0 %v3535_v10 }
  0x5e   : > { %3105 = vmatmul.mubr.bf16.gmra.mrb[28].mxu1 %v3517_v8 }
  0x5f   : > { %3233 = vmatmul.mubr.bf16.gmra.mrb[12].mxu0 %v3519_v12  ;;  %3124 = vmatprep.mubr.bf16.mxu1 %v3521_v13 }
  0x60   : > { %3236 = vmatprep.mubr.bf16.mxu0 %v3522_v14  ;;  %3265 = vmatpush3.bf16.msra.mxu0 %v3535_v10 }
  0x61   : > { %3266 = vmatprep.subr.bf16.mxu0 %v3540_v16 }
  0x64   : > { %3267 = vmatpush3.bf16.msra.mxu0 %v3540_v16 }
  0x66   : > { %3125 = vmatmul.mubr.bf16.vlgmr.msra.gmra.mrb[0].mxu1 %v3523_v18 }
  0x67   : > { %3237 = vmatmul.mubr.bf16.gmra.mrb[16].mxu0 %v3524_v19  ;;  %3308 = vmatpush3.bf16.msra.mxu1 %v3620_v1  ;;  %v3533_v1 = vld [vmem:[%s3667_s14 + $0x28] sm:$0xff]  }
  0x68   : > { %3128 = vmatprep.mubr.bf16.mxu1 %v3526_v20  ;;  %3240 = vmatprep.mubr.bf16.mxu0 %v3527_v21 }
  0x69   : > { %3301 = vmatprep.subr.bf16.mxu1 %v3629_v3 }
  0x6b   : > { %3309 = vmatpush3.bf16.msra.mxu1 %v3629_v3  ;;  %v3537_v3 = vld [vmem:[%s3667_s14 + $0x88] sm:$0xff]  }
  0x6c   : > { %3302 = vmatprep.subr.bf16.mxu1 %v3639_v5 }
  0x6e   : > { %3129 = vmatmul.mubr.bf16.gmra.mrb[4].mxu1 %v3528_v22 }
  0x6f   : > { %3241 = vmatmul.mubr.bf16.gmra.mrb[20].mxu0 %v3529_v23  ;;  %3132 = vmatprep.mubr.bf16.mxu1 %v3531_v24 }
  0x70   : > { %3244 = vmatprep.mubr.bf16.mxu0 %v3532_v25  ;;  %3310 = vmatpush3.bf16.msra.mxu1 %v3639_v5  ;;  %v3538_v5 = vld [vmem:[%s3667_s14 + $0x38] sm:$0xff]  }
  0x71   : > { %3303 = vmatprep.subr.bf16.mxu1 %v3651_v7 }
  0x74   : > { %3311 = vmatpush3.bf16.msra.mxu1 %v3651_v7  ;;  %v3543_v7 = vld [vmem:[%s3667_s14 + $0x48] sm:$0xff]  }
  0x75   : > { %3304 = vmatprep.subr.bf16.mxu1 %v3662_v9 }
  0x76   : > { %3133 = vmatmul.mubr.bf16.gmra.mrb[8].mxu1 %v3533_v1 }
  0x77   : > { %3245 = vmatmul.mubr.bf16.gmra.mrb[24].mxu0 %v3534_v26  ;;  %3136 = vmatprep.mubr.bf16.mxu1 %v3536_v27 }
  0x78   : > { %3248 = vmatprep.mubr.bf16.mxu0 %v3537_v3  ;;  %3312 = vmatpush3.bf16.msra.mxu1 %v3662_v9  ;;  %v3544_v9 = vld [vmem:[%s3667_s14 + $0x28] sm:$0xff]  }
  0x79   : > { %3305 = vmatprep.subr.bf16.mxu1 %v3675_v11 }
  0x7c   : > { %3313 = vmatpush3.bf16.msra.mxu1 %v3675_v11  ;;  %v3546_v11 = vld [vmem:[%s3667_s14 + $0x30] sm:$0xff]  }
  0x7d   : > { %3306 = vmatprep.subr.bf16.mxu1 %v3689_v15 }
  0x7e   : > { %3137 = vmatmul.mubr.bf16.gmra.mrb[12].mxu1 %v3538_v5 }
  0x7f   : > { %3249 = vmatmul.mubr.bf16.gmra.mrb[28].mxu0 %v3539_v28  ;;  %3140 = vmatprep.mubr.bf16.mxu1 %v3541_v29 }
  0x80   : > { %3268 = vmatprep.mubr.bf16.mxu0 %v3542_v30  ;;  %3314 = vmatpush3.bf16.msra.mxu1 %v3689_v15  ;;  %v3549_v15 = vld [vmem:[%s3667_s14 + $0x60] sm:$0xff]  }
  0x81   : > { %3307 = vmatprep.subr.bf16.mxu1 %v3699_v17 }
  0x84   : > { %3315 = vmatpush3.bf16.msra.mxu1 %v3699_v17  ;;  %v3552_v17 = vld [vmem:[%s3667_s14 + $0x48] sm:$0xff]   ;;  %s2812_s14 = sshll.u32 %s3921_s16, 7 }
  0x85   : > { %s3882_s7 = scalar_lea.vmem %s3917_s2, %s2812_s14 }
  0x86   : > { %3141 = vmatmul.mubr.bf16.gmra.mrb[16].mxu1 %v3543_v7 }
  0x87   : > { %3269 = vmatmul.mubr.bf16.vlgmr.msra.gmra.mrb[0].mxu0 %v3544_v9  ;;  %3144 = vmatprep.mubr.bf16.mxu1 %v3545_v31 }
  0x88   : > { %3272 = vmatprep.mubr.bf16.mxu0 %v3546_v11 }
  0x8e   : > { %3145 = vmatmul.mubr.bf16.gmra.mrb[20].mxu1 %v3547_v32 }
  0x8f   : > { %3273 = vmatmul.mubr.bf16.gmra.mrb[4].mxu0 %v3548_v33  ;;  %3148 = vmatprep.mubr.bf16.mxu1 %v3549_v15 }
  0x90   : > { %3276 = vmatprep.mubr.bf16.mxu0 %v3550_v34 }
  0x96   : > { %3149 = vmatmul.mubr.bf16.gmra.mrb[24].mxu1 %v3551_v35 }
  0x97   : > { %3277 = vmatmul.mubr.bf16.gmra.mrb[8].mxu0 %v3552_v17  ;;  %3152 = vmatprep.mubr.bf16.mxu1 %v3553_v36 }
  0x98   : > { %3280 = vmatprep.mubr.bf16.mxu0 %v3554_v37 }
  0x9e   : > { %3153 = vmatmul.mubr.bf16.gmra.mrb[28].mxu1 %v3555_v38 }
  0x9f   : > { %3281 = vmatmul.mubr.bf16.gmra.mrb[12].mxu0 %v3556_v39  ;;  %3188 = vmatprep.mubr.bf16.mxu1 %v3557_v40 }
  0xa0   : > { %3284 = vmatprep.mubr.bf16.mxu0 %v3558_v41 }
  0xa6   : > { %3189 = vmatmul.mubr.bf16.vlgmr.msra.gmra.mrb[16].mxu1 %v3559_v42 }
  0xa7   : > { %3285 = vmatmul.mubr.bf16.gmra.mrb[16].mxu0 %v3560_v43  ;;  %3192 = vmatprep.mubr.bf16.mxu1 %v3561_v44 }
  0xa8   : > { %3288 = vmatprep.mubr.bf16.mxu0 %v3562_v45 }
  0xae   : > { %3193 = vmatmul.mubr.bf16.gmra.mrb[20].mxu1 %v3563_v46 }
  0xaf   : > { %3289 = vmatmul.mubr.bf16.gmra.mrb[20].mxu0 %v3564_v47  ;;  %3196 = vmatprep.mubr.bf16.mxu1 %v3565_v48 }
  0xb0   : > { %3292 = vmatprep.mubr.bf16.mxu0 %v3566_v49 }
  0xb6   : > { %3197 = vmatmul.mubr.bf16.gmra.mrb[24].mxu1 %v3567_v50 }
  0xb7   : > { %3293 = vmatmul.mubr.bf16.gmra.mrb[24].mxu0 %v3568_v51  ;;  %3200 = vmatprep.mubr.bf16.mxu1 %v3569_v52 }
  0xb8   : > { %3296 = vmatprep.mubr.bf16.mxu0 %v3570_v53 }
  0xbe   : > { %3201 = vmatmul.mubr.bf16.gmra.mrb[28].mxu1 %v3571_v54 }
  0xbf   : > { %3297 = vmatmul.mubr.bf16.gmra.mrb[28].mxu0 %v3572_v55 }
 0x139   : > { %v3126_v56 = vpop.f32.mrb[0].mxu1 }
 0x13a   : > { %v797_v57 = vpop.f32.mrb[1].mxu1 }
 0x13b   : > { %v3127_v58 = vpop.f32.mrb[2].mxu1 }
 0x13c   : > { %v800_v59 = vpop.f32.mrb[3].mxu1 }
 0x141   : > { %v3130_v60 = vpop.f32.mrb[4].mxu1 }
 0x142   : > { %v813_v61 = vpop.f32.mrb[5].mxu1 }
 0x143   : > { %v3131_v62 = vpop.f32.mrb[6].mxu1 }
 0x144   : > { %v816_v63 = vpop.f32.mrb[7].mxu1 }
 0x149   : > { %v3134_v0 = vpop.f32.mrb[8].mxu1 }
 0x14a   : > { %v829_v2 = vpop.f32.mrb[9].mxu1 }
 0x14b   : > { %v3135_v4 = vpop.f32.mrb[10].mxu1 }
 0x14c   : > { %v832_v6 = vpop.f32.mrb[11].mxu1 }
 0x151   : > { %v3870_v8 = vpop.f32.mrb[12].mxu1 }
 0x152   : > { %v3872_v10 = vpop.f32.mrb[13].mxu1 }
 0x153   : > { %v3874_v12 = vpop.f32.mrb[14].mxu1 }
 0x154   : > { %v3876_v13 = vpop.f32.mrb[15].mxu1 }
 0x15a   : > { %v3270_v14 = vpop.f32.mrb[0].mxu0 }
 0x15b   : > { %v3316_v16 = vadd.f32 %v3270_v14, %v3126_v56  ;;  %v1926_v18 = vpop.f32.mrb[1].mxu0 }
 0x15c   : > { %v3317_v19 = vadd.f32 %v1926_v18, %v797_v57  ;;  %v3271_v20 = vpop.f32.mrb[2].mxu0 }
 0x15d   : > { %v3318_v21 = vadd.f32 %v3271_v20, %v3127_v58  ;;  %v1929_v22 = vpop.f32.mrb[3].mxu0  ;;  %v2285_v3 = vmul.f32 %v3316_v16, %v3316_v16 }
 0x15e   : > { %v3319_v23 = vadd.f32 %v1929_v22, %v800_v59  ;;  %v2283_v25 = vmul.f32 %v3317_v19, %v3317_v19 }
 0x15f   : > { %v2853_v24 = vpack.c.bf16 %v3318_v21, %v3316_v16  ;;  %v2286_v9 = vmul.f32 %v3318_v21, %v3318_v21 }
 0x160   : > { %v2848_v1 = vpack.c.bf16 %v3319_v23, %v3317_v19  ;;  %v2245_v26 = vadd.f32 %v3319_v23, %v3317_v19  ;;  %v2284_v27 = vmul.f32 %v3319_v23, %v3319_v23 }
 0x161   : > { %2925 = vst [vmem:[%s3882_s7 + $0x8] sm:$0xff] %v2853_v24  }
 0x162   : > { %2849 = vst [vmem:[%s3882_s7] sm:$0xff] %v2848_v1   ;;  %v2246_v5 = vadd.f32 %v3316_v16, %v2245_v26  ;;  %v2315_v28 = vadd.f32 %v2284_v27, %v2283_v25  ;;  %v3274_v29 = vpop.f32.mrb[4].mxu0 }
 0x163   : > { %v3320_v30 = vadd.f32 %v3274_v29, %v3130_v60  ;;  %v1942_v7 = vpop.f32.mrb[5].mxu0 }
 0x164   : > { %v2316_v31 = vadd.f32 %v2315_v28, %v2285_v3  ;;  %v3321_v11 = vadd.f32 %v1942_v7, %v813_v61  ;;  %v2247_v32 = vadd.f32 %v3318_v21, %v2246_v5  ;;  %v3275_v33 = vpop.f32.mrb[6].mxu0 }
 0x165   : > { %v3322_v15 = vadd.f32 %v3275_v33, %v3131_v62  ;;  %v1945_v34 = vpop.f32.mrb[7].mxu0  ;;  %v2289_v43 = vmul.f32 %v3320_v30, %v3320_v30 }
 0x166   : > { %v2248_v35 = vadd.f32 %v3321_v11, %v2247_v32  ;;  %v2287_v17 = vmul.f32 %v3321_v11, %v3321_v11  ;;  %v2317_v36 = vadd.f32 %v2316_v31, %v2286_v9  ;;  %v3323_v37 = vadd.f32 %v1945_v34, %v816_v63 }
 0x167   : > { %v2863_v38 = vpack.c.bf16 %v3322_v15, %v3320_v30  ;;  %v2290_v49 = vmul.f32 %v3322_v15, %v3322_v15 }
 0x168   : > { %v2318_v39 = vadd.f32 %v2317_v36, %v2287_v17  ;;  %v2858_v40 = vpack.c.bf16 %v3323_v37, %v3321_v11  ;;  %v2249_v41 = vadd.f32 %v3323_v37, %v2248_v35  ;;  %v2288_v42 = vmul.f32 %v3323_v37, %v3323_v37 }
 0x169   : > { %2927 = vst [vmem:[%s3882_s7 + $0x18] sm:$0xff] %v2863_v38  }
 0x16a   : > { %2926 = vst [vmem:[%s3882_s7 + $0x10] sm:$0xff] %v2858_v40   ;;  %v2250_v44 = vadd.f32 %v3320_v30, %v2249_v41  ;;  %v2319_v45 = vadd.f32 %v2318_v39, %v2288_v42  ;;  %v3278_v46 = vpop.f32.mrb[8].mxu0 }
 0x16b   : > { %v3324_v47 = vadd.f32 %v3278_v46, %v3134_v0  ;;  %v1958_v48 = vpop.f32.mrb[9].mxu0 }
 0x16c   : > { %v2320_v50 = vadd.f32 %v2319_v45, %v2289_v43  ;;  %v3325_v51 = vadd.f32 %v1958_v48, %v829_v2  ;;  %v2251_v52 = vadd.f32 %v3322_v15, %v2250_v44  ;;  %v3279_v53 = vpop.f32.mrb[10].mxu0 }
 0x16d   : > { %v3326_v54 = vadd.f32 %v3279_v53, %v3135_v4  ;;  %v1961_v55 = vpop.f32.mrb[11].mxu0  ;;  %v2293_v0 = vmul.f32 %v3324_v47, %v3324_v47 }
 0x16e   : > { %v2252_v56 = vadd.f32 %v3325_v51, %v2251_v52  ;;  %v2291_v57 = vmul.f32 %v3325_v51, %v3325_v51  ;;  %v2321_v58 = vadd.f32 %v2320_v50, %v2290_v49  ;;  %v3327_v59 = vadd.f32 %v1961_v55, %v832_v6 }
 0x16f   : > { %v2873_v60 = vpack.c.bf16 %v3326_v54, %v3324_v47  ;;  %v2294_v4 = vmul.f32 %v3326_v54, %v3326_v54 }
 0x170   : > { %v2322_v61 = vadd.f32 %v2321_v58, %v2291_v57  ;;  %v2868_v62 = vpack.c.bf16 %v3327_v59, %v3325_v51  ;;  %v2253_v63 = vadd.f32 %v3327_v59, %v2252_v56  ;;  %v2292_v14 = vmul.f32 %v3327_v59, %v3327_v59 }
 0x171   : > { %2929 = vst [vmem:[%s3882_s7 + $0x28] sm:$0xff] %v2873_v60  }
 0x172   : > { %2928 = vst [vmem:[%s3882_s7 + $0x20] sm:$0xff] %v2868_v62   ;;  %v2254_v16 = vadd.f32 %v3324_v47, %v2253_v63  ;;  %v2323_v18 = vadd.f32 %v2322_v61, %v2292_v14  ;;  %v3282_v2 = vpop.f32.mrb[12].mxu0 }
 0x173   : > { %v3328_v19 = vadd.f32 %v3282_v2, %v3870_v8  ;;  %v1974_v20 = vpop.f32.mrb[13].mxu0 }
 0x174   : > { %v2324_v21 = vadd.f32 %v2323_v18, %v2293_v0  ;;  %v3329_v22 = vadd.f32 %v1974_v20, %v3872_v10  ;;  %v2255_v6 = vadd.f32 %v3326_v54, %v2254_v16  ;;  %v3283_v23 = vpop.f32.mrb[14].mxu0 }
 0x175   : > { %v3330_v24 = vadd.f32 %v3283_v23, %v3874_v12  ;;  %v1977_v25 = vpop.f32.mrb[15].mxu0  ;;  %v2297_v9 = vmul.f32 %v3328_v19, %v3328_v19 }
 0x176   : > { %v2256_v1 = vadd.f32 %v3329_v22, %v2255_v6  ;;  %v2295_v26 = vmul.f32 %v3329_v22, %v3329_v22  ;;  %v2325_v27 = vadd.f32 %v2324_v21, %v2294_v4  ;;  %v3331_v3 = vadd.f32 %v1977_v25, %v3876_v13 }
 0x177   : > { %v2883_v5 = vpack.c.bf16 %v3330_v24, %v3328_v19  ;;  %v2298_v34 = vmul.f32 %v3330_v24, %v3330_v24 }
 0x178   : > { %v2326_v28 = vadd.f32 %v2325_v27, %v2295_v26  ;;  %v2878_v8 = vpack.c.bf16 %v3331_v3, %v3329_v22  ;;  %v2257_v29 = vadd.f32 %v3331_v3, %v2256_v1  ;;  %v2296_v30 = vmul.f32 %v3331_v3, %v3331_v3 }
 0x179   : > { %2931 = vst [vmem:[%s3882_s7 + $0x38] sm:$0xff] %v2883_v5   ;;  %v3190_v7 = vpop.f32.mrb[16].mxu1 }
 0x17a   : > { %2930 = vst [vmem:[%s3882_s7 + $0x30] sm:$0xff] %v2878_v8   ;;  %v2258_v10 = vadd.f32 %v3328_v19, %v2257_v29  ;;  %v2327_v31 = vadd.f32 %v2326_v28, %v2296_v30  ;;  %v3286_v11 = vpop.f32.mrb[16].mxu0  ;;  %v1216_v32 = vpop.f32.mrb[17].mxu1 }
 0x17b   : > { %v3332_v12 = vadd.f32 %v3286_v11, %v3190_v7  ;;  %v1990_v33 = vpop.f32.mrb[17].mxu0  ;;  %v3191_v15 = vpop.f32.mrb[18].mxu1 }
 0x17c   : > { %v2328_v35 = vadd.f32 %v2327_v31, %v2297_v9  ;;  %v3333_v13 = vadd.f32 %v1990_v33, %v1216_v32  ;;  %v2259_v17 = vadd.f32 %v3330_v24, %v2258_v10  ;;  %v3287_v36 = vpop.f32.mrb[18].mxu0  ;;  %v1219_v37 = vpop.f32.mrb[19].mxu1 }
 0x17d   : > { %v3334_v38 = vadd.f32 %v3287_v36, %v3191_v15  ;;  %v1993_v39 = vpop.f32.mrb[19].mxu0  ;;  %v2301_v50 = vmul.f32 %v3332_v12, %v3332_v12 }
 0x17e   : > { %v2260_v40 = vadd.f32 %v3333_v13, %v2259_v17  ;;  %v2299_v41 = vmul.f32 %v3333_v13, %v3333_v13  ;;  %v2329_v42 = vadd.f32 %v2328_v35, %v2298_v34  ;;  %v3335_v43 = vadd.f32 %v1993_v39, %v1219_v37 }
 0x17f   : > { %v2893_v44 = vpack.c.bf16 %v3334_v38, %v3332_v12  ;;  %v2302_v58 = vmul.f32 %v3334_v38, %v3334_v38 }
 0x180   : > { %v2330_v45 = vadd.f32 %v2329_v42, %v2299_v41  ;;  %v2888_v46 = vpack.c.bf16 %v3335_v43, %v3333_v13  ;;  %v2261_v47 = vadd.f32 %v3335_v43, %v2260_v40  ;;  %v2300_v48 = vmul.f32 %v3335_v43, %v3335_v43 }
 0x181   : > { %2933 = vst [vmem:[%s3882_s7 + $0x48] sm:$0xff] %v2893_v44   ;;  %v3194_v49 = vpop.f32.mrb[20].mxu1 }
 0x182   : > { %2932 = vst [vmem:[%s3882_s7 + $0x40] sm:$0xff] %v2888_v46   ;;  %v2262_v51 = vadd.f32 %v3332_v12, %v2261_v47  ;;  %v2331_v52 = vadd.f32 %v2330_v45, %v2300_v48  ;;  %v3290_v53 = vpop.f32.mrb[20].mxu0  ;;  %v1232_v54 = vpop.f32.mrb[21].mxu1 }
 0x183   : > { %v3336_v55 = vadd.f32 %v3290_v53, %v3194_v49  ;;  %v2006_v56 = vpop.f32.mrb[21].mxu0  ;;  %v3195_v57 = vpop.f32.mrb[22].mxu1 }
 0x184   : > { %v2332_v59 = vadd.f32 %v2331_v52, %v2301_v50  ;;  %v3337_v60 = vadd.f32 %v2006_v56, %v1232_v54  ;;  %v2263_v61 = vadd.f32 %v3334_v38, %v2262_v51  ;;  %v3291_v62 = vpop.f32.mrb[22].mxu0  ;;  %v1235_v63 = vpop.f32.mrb[23].mxu1 }
 0x185   : > { %v3338_v14 = vadd.f32 %v3291_v62, %v3195_v57  ;;  %v2009_v0 = vpop.f32.mrb[23].mxu0  ;;  %v2305_v24 = vmul.f32 %v3336_v55, %v3336_v55 }
 0x186   : > { %v2264_v16 = vadd.f32 %v3337_v60, %v2263_v61  ;;  %v2303_v18 = vmul.f32 %v3337_v60, %v3337_v60  ;;  %v2333_v2 = vadd.f32 %v2332_v59, %v2302_v58  ;;  %v3339_v19 = vadd.f32 %v2009_v0, %v1235_v63 }
 0x187   : > { %v2903_v20 = vpack.c.bf16 %v3338_v14, %v3336_v55  ;;  %v2306_v8 = vmul.f32 %v3338_v14, %v3338_v14 }
 0x188   : > { %v2334_v4 = vadd.f32 %v2333_v2, %v2303_v18  ;;  %v2898_v21 = vpack.c.bf16 %v3339_v19, %v3337_v60  ;;  %v2265_v22 = vadd.f32 %v3339_v19, %v2264_v16  ;;  %v2304_v6 = vmul.f32 %v3339_v19, %v3339_v19 }
 0x189   : > { %2935 = vst [vmem:[%s3882_s7 + $0x58] sm:$0xff] %v2903_v20   ;;  %v3198_v23 = vpop.f32.mrb[24].mxu1 }
 0x18a   : > { %2934 = vst [vmem:[%s3882_s7 + $0x50] sm:$0xff] %v2898_v21   ;;  %v2266_v25 = vadd.f32 %v3336_v55, %v2265_v22  ;;  %v2335_v1 = vadd.f32 %v2334_v4, %v2304_v6  ;;  %v3294_v26 = vpop.f32.mrb[24].mxu0  ;;  %v1248_v27 = vpop.f32.mrb[25].mxu1 }
 0x18b   : > { %v3340_v3 = vadd.f32 %v3294_v26, %v3198_v23  ;;  %v2022_v5 = vpop.f32.mrb[25].mxu0  ;;  %v3199_v28 = vpop.f32.mrb[26].mxu1 }
 0x18c   : > { %v2336_v29 = vadd.f32 %v2335_v1, %v2305_v24  ;;  %v3341_v30 = vadd.f32 %v2022_v5, %v1248_v27  ;;  %v2267_v7 = vadd.f32 %v3338_v14, %v2266_v25  ;;  %v3295_v9 = vpop.f32.mrb[26].mxu0  ;;  %v1251_v10 = vpop.f32.mrb[27].mxu1 }
 0x18d   : > { %v3342_v31 = vadd.f32 %v3295_v9, %v3199_v28  ;;  %v2025_v11 = vpop.f32.mrb[27].mxu0  ;;  %v2309_v38 = vmul.f32 %v3340_v3, %v3340_v3 }
 0x18e   : > { %v2268_v32 = vadd.f32 %v3341_v30, %v2267_v7  ;;  %v2307_v12 = vmul.f32 %v3341_v30, %v3341_v30  ;;  %v2337_v33 = vadd.f32 %v2336_v29, %v2306_v8  ;;  %v3343_v15 = vadd.f32 %v2025_v11, %v1251_v10 }
 0x18f   : > { %v2913_v34 = vpack.c.bf16 %v3342_v31, %v3340_v3  ;;  %v2310_v46 = vmul.f32 %v3342_v31, %v3342_v31 }
 0x190   : > { %v2338_v35 = vadd.f32 %v2337_v33, %v2307_v12  ;;  %v2908_v13 = vpack.c.bf16 %v3343_v15, %v3341_v30  ;;  %v2269_v17 = vadd.f32 %v3343_v15, %v2268_v32  ;;  %v2308_v36 = vmul.f32 %v3343_v15, %v3343_v15 }
 0x191   : > { %2937 = vst [vmem:[%s3882_s7 + $0x68] sm:$0xff] %v2913_v34   ;;  %v3202_v37 = vpop.f32.mrb[28].mxu1 }
 0x192   : > { %2936 = vst [vmem:[%s3882_s7 + $0x60] sm:$0xff] %v2908_v13   ;;  %v2270_v39 = vadd.f32 %v3340_v3, %v2269_v17  ;;  %v2339_v40 = vadd.f32 %v2338_v35, %v2308_v36  ;;  %v3298_v41 = vpop.f32.mrb[28].mxu0  ;;  %v1264_v42 = vpop.f32.mrb[29].mxu1 }
 0x193   : > { %v3344_v43 = vadd.f32 %v3298_v41, %v3202_v37  ;;  %v2038_v44 = vpop.f32.mrb[29].mxu0  ;;  %v3203_v45 = vpop.f32.mrb[30].mxu1 }
 0x194   : > { %v2340_v47 = vadd.f32 %v2339_v40, %v2309_v38  ;;  %v3345_v48 = vadd.f32 %v2038_v44, %v1264_v42  ;;  %v2271_v49 = vadd.f32 %v3342_v31, %v2270_v39  ;;  %v3299_v50 = vpop.f32.mrb[30].mxu0  ;;  %v1267_v51 = vpop.f32.mrb[31].mxu1 }
 0x195   : > { %v3346_v52 = vadd.f32 %v3299_v50, %v3203_v45  ;;  %v2041_v53 = vpop.f32.mrb[31].mxu0  ;;  %v2313_v63 = vmul.f32 %v3344_v43, %v3344_v43 }
 0x196   : > { %v2272_v54 = vadd.f32 %v3345_v48, %v2271_v49  ;;  %v2311_v55 = vmul.f32 %v3345_v48, %v3345_v48  ;;  %v2341_v56 = vadd.f32 %v2340_v47, %v2310_v46  ;;  %v3347_v57 = vadd.f32 %v2041_v53, %v1267_v51 }
 0x197   : > { %v2923_v58 = vpack.c.bf16 %v3346_v52, %v3344_v43  ;;  %v2314_v16 = vmul.f32 %v3346_v52, %v3346_v52 }
 0x198   : > { %v2342_v59 = vadd.f32 %v2341_v56, %v2311_v55  ;;  %v2918_v60 = vpack.c.bf16 %v3347_v57, %v3345_v48  ;;  %v2273_v61 = vadd.f32 %v3347_v57, %v2272_v54  ;;  %v2312_v62 = vmul.f32 %v3347_v57, %v3347_v57 }
 0x199   : > { %2939 = vst [vmem:[%s3882_s7 + $0x78] sm:$0xff] %v2923_v58  }
 0x19a   : > { %2938 = vst [vmem:[%s3882_s7 + $0x70] sm:$0xff] %v2918_v60   ;;  %v2274_v14 = vadd.f32 %v3344_v43, %v2273_v61  ;;  %v2343_v0 = vadd.f32 %v2342_v59, %v2312_v62 }
 0x19c   : > { %v2275_v18 = vadd.f32 %v3346_v52, %v2274_v14  ;;  %v2344_v2 = vadd.f32 %v2343_v0, %v2313_v63 }
 0x19e   : > { %v2276_v19 = vrot.slane %v2275_v18, 4  ;;  %v2345_v20 = vadd.f32 %v2344_v2, %v2314_v16 }
 0x1a0   : > { %v2277_v4 = vadd.f32 %v2276_v19, %v2275_v18  ;;  %v2346_v21 = vrot.slane %v2345_v20, 4 }
 0x1a2   : > { %v2278_v22 = vrot.slane %v2277_v4, 2  ;;  %v2347_v6 = vadd.f32 %v2346_v21, %v2345_v20 }
 0x1a4   : > { %v2279_v23 = vadd.f32 %v2278_v22, %v2277_v4  ;;  %v2348_v24 = vrot.slane %v2347_v6, 2 }
 0x1a6   : > { %v2280_v25 = vrot.slane %v2279_v23, 1  ;;  %v2349_v1 = vadd.f32 %v2348_v24, %v2347_v6 }
 0x1a8   : > { %v2281_v26 = vadd.f32 %v2280_v25, %v2279_v23  ;;  %v2350_v27 = vrot.slane %v2349_v1, 1 }
 0x1aa   : > { %2282 = vst [vmem:[%s211_s10] sm:$0x1] %v2281_v26  ;;  %v2351_v3 = vadd.f32 %v2350_v27, %v2349_v1 }
 0x1ac   : > { %2352 = vst [vmem:[%s214_s13] sm:$0x1] %v2351_v3 }
 0x1ad PF: > { %s15_s15 = sadd.s32 1, %s3579_s15  }
 0x1ae   : > { %p12_p4 = scmp.ge.s32.totalorder %s15_s15, 4  }
 0x1b0   :  { %14 = sbr.rel (!%p12_p4) target bundleno = 1 (0x1), region = 90 }

</bundles_post_ra>
